<compile_context>
chip_gen: v7x
topology: tpu7x:2x2x1
jax: 0.10.0
libtpu: 0.0.40
codegen_flags: <defaults>
</compile_context>

<pallas_src>
import functools

import numpy as np
import jax
import jax.numpy as jnp
from jax import lax
from jax.experimental import pallas as pl
from jax.experimental.pallas import tpu as pltpu


def _round_up(x, m):
    return (x + m - 1) // m * m


def _depth_flow_proj_kernel(rmin_ref, rmax_ref, packed_ref, out_ref,
                            acc_ref, bhi_ref, blo_ref,
                            *, H, W, H_TILE, W_PAD):
    n = pl.program_id(0)
    h = pl.program_id(1)
    pk = pl.program_id(2)
    num_k = pl.num_programs(2)

    @pl.when(pk == 0)
    def _init():
        acc_ref[...] = jnp.zeros_like(acc_ref)

    # ---- runtime band-skip (scalar-prefetched target-row band in SMEM) ----
    h0 = h * H_TILE
    idx = n * num_k + pk
    band_min = rmin_ref[idx]
    band_max = rmax_ref[idx]
    hit = (band_max >= h0) & (band_min < h0 + H_TILE)

    @pl.when(hit)
    def _contribute():
        blk = packed_ref[0]                      # (5, PT) = [fx; fy; depth; xs; ys]
        fx = blk[0:1, :]
        fy = blk[1:2, :]
        d = blk[2:3, :]
        xs = blk[3:4, :]
        ys = blk[4:5, :]
        PT = blk.shape[1]

        x2 = xs + fx
        y2 = ys + fy
        valid = ((x2 >= 0.0) & (y2 >= 0.0)
                 & (x2 <= float(W - 1)) & (y2 <= float(H - 1))
                 & (jnp.abs(fx) < float(W) * 0.5) & (jnp.abs(fy) < float(H) * 0.5))
        wgt = jnp.where(valid, d, 0.0)           # depth weight, 0 for invalid/padded

        ixL = jnp.clip(jnp.floor(x2).astype(jnp.int32), 0, W - 1)
        iyT = jnp.clip(jnp.floor(y2).astype(jnp.int32), 0, H - 1)
        ixR = jnp.minimum(ixL + 1, W - 1)
        iyB = jnp.minimum(iyT + 1, H - 1)

        # Factorized one-hot splat operands; entries in {0,1,2} (exact in bf16).
        tx = lax.broadcasted_iota(jnp.int32, (W_PAD, PT), 0)
        A_x = ((tx == ixL).astype(jnp.float32)
               + (tx == ixR).astype(jnp.float32)).astype(jnp.bfloat16)   # (W_PAD, PT)

        ty = lax.broadcasted_iota(jnp.int32, (H_TILE, PT), 0) + h0
        A_y = (ty == iyT).astype(jnp.float32) + (ty == iyB).astype(jnp.float32)

        A_yw = A_y * wgt                                                 # (H_TILE, PT)
        # B rows: [-fx*depth splat ; -fy*depth splat ; depth count].  Written
        # directly into persistent scratch (no concat copy), split bf16 hi/lo.
        for r, v in enumerate(((-fx) * A_yw, (-fy) * A_yw, A_yw)):
            hi = v.astype(jnp.bfloat16)
            lo = (v - hi.astype(jnp.float32)).astype(jnp.bfloat16)
            bhi_ref[r * H_TILE:(r + 1) * H_TILE, :] = hi
            blo_ref[r * H_TILE:(r + 1) * H_TILE, :] = lo

        dn = (((1,), (1,)), ((), ()))
        acc_ref[...] += (
            lax.dot_general(bhi_ref[...], A_x, dn,
                            preferred_element_type=jnp.float32)
            + lax.dot_general(blo_ref[...], A_x, dn,
                              preferred_element_type=jnp.float32))       # (3*H_TILE, W_PAD)

    @pl.when(pk == num_k - 1)
    def _finalize():
        acc = acc_ref[...]
        splat_x = acc[0:H_TILE, :]
        splat_y = acc[H_TILE:2 * H_TILE, :]
        cnt = acc[2 * H_TILE:3 * H_TILE, :]
        pos = cnt > 0.0
        inv = pl.reciprocal(jnp.where(pos, cnt, 1.0), approx=False)   # EUP, exact
        # where cnt == 0 the splat is 0, so multiplying by 1.0 matches the reference.
        out_ref[0, 0, :, :] = splat_x * inv
        out_ref[0, 1, :, :] = splat_y * inv


def depth_flow_proj(flow, depth, *, p_tile=None, h_tile=None):
    """Forward of ModuleDepthFlowProj.  flow: (N,2,H,W) f32, depth: (N,1,H,W) f32."""
    N, C, H, W = flow.shape
    assert C == 2
    assert depth.shape == (N, 1, H, W)
    P = H * W

    # ---- tile-size selection ----
    if p_tile is None:
        p_tile = min(1024, _round_up(P, 128))
    p_tile = _round_up(p_tile, 128)
    P_pad = _round_up(P, p_tile)
    num_k = P_pad // p_tile

    if h_tile is None:
        # 3*h_tile = 768: multiple of the 256-row MXU on v6e/v7x.
        h_tile = min(256, _round_up(H, 16))
    h_tile = _round_up(h_tile, 16)               # 16: bf16 sublane-tile alignment
    H_pad = _round_up(H, h_tile)
    # v7x shards the parallel grid axes across 2 TensorCores: with a single
    # batch, keep at least 2 output-row blocks.
    if N == 1 and H_pad // h_tile < 2 and H > 16:
        h_tile = _round_up(max(16, (H + 1) // 2), 16)
        H_pad = _round_up(H, h_tile)

    W_pad = _round_up(W, 128)
    if W_pad > 128:
        W_pad = _round_up(W_pad, 256)            # MXU N dim is 256 on v6e/v7x

    # ---- operand packing: one sublane-dense stream [fx, fy, depth, xs, ys] ----
    flow_f = jnp.asarray(flow, jnp.float32).reshape(N, 2, P)
    depth_f = jnp.asarray(depth, jnp.float32).reshape(N, 1, P)
    if P_pad != P:
        # Padded pixels: flow/depth 0 and ys >= H below -> invalid -> no contribution.
        flow_f = jnp.pad(flow_f, ((0, 0), (0, 0), (0, P_pad - P)))
        depth_f = jnp.pad(depth_f, ((0, 0), (0, 0), (0, P_pad - P)))

    pid = jnp.arange(P_pad, dtype=jnp.int32)
    xs = (pid % W).astype(jnp.float32)
    ys = (pid // W).astype(jnp.float32)          # padded pids get ys >= H
    coords = jnp.broadcast_to(jnp.stack([xs, ys], axis=0)[None], (N, 2, P_pad))
    packed = jnp.concatenate([flow_f, depth_f, coords], axis=1)      # (N, 5, P_pad)

    # ---- per (batch, pixel-tile) target-row band for the runtime band-skip ----
    x2 = xs[None, :] + flow_f[:, 0, :]
    y2 = ys[None, :] + flow_f[:, 1, :]
    valid = ((x2 >= 0.0) & (y2 >= 0.0)
             & (x2 <= float(W - 1)) & (y2 <= float(H - 1))
             & (jnp.abs(flow_f[:, 0, :]) < float(W) * 0.5)
             & (jnp.abs(flow_f[:, 1, :]) < float(H) * 0.5))
    iyT = jnp.clip(jnp.floor(y2).astype(jnp.int32), 0, H - 1)
    iyB = jnp.minimum(iyT + 1, H - 1)
    row_min = jnp.min(jnp.where(valid, iyT, H).reshape(N, num_k, p_tile),
                      axis=-1).reshape(-1).astype(jnp.int32)         # (N*num_k,)
    row_max = jnp.max(jnp.where(valid, iyB, -1).reshape(N, num_k, p_tile),
                      axis=-1).reshape(-1).astype(jnp.int32)         # (N*num_k,)

    grid = (N, H_pad // h_tile, num_k)

    kernel = functools.partial(_depth_flow_proj_kernel, H=H, W=W,
                               H_TILE=h_tile, W_PAD=W_pad)

    out = pl.pallas_call(
        kernel,
        out_shape=jax.ShapeDtypeStruct((N, 2, H_pad, W_pad), jnp.float32),
        grid_spec=pltpu.PrefetchScalarGridSpec(
            num_scalar_prefetch=2,
            grid=grid,
            in_specs=[
                pl.BlockSpec((1, 5, p_tile), lambda n, h, k, rmin, rmax: (n, 0, k)),
            ],
            out_specs=pl.BlockSpec((1, 2, h_tile, W_pad),
                                   lambda n, h, k, rmin, rmax: (n, 0, h, 0)),
            scratch_shapes=[
                pltpu.VMEM((3 * h_tile, W_pad), jnp.float32),     # accumulator
                pltpu.VMEM((3 * h_tile, p_tile), jnp.bfloat16),   # B hi
                pltpu.VMEM((3 * h_tile, p_tile), jnp.bfloat16),   # B lo
            ],
        ),
        compiler_params=pltpu.CompilerParams(
            dimension_semantics=("parallel", "parallel", "arbitrary"),
            vmem_limit_bytes=48 * 1024 * 1024),
    )(row_min, row_max, packed)

    if H_pad == H and W_pad == W:
        return out                                # no trailing un-pad copy needed
    return out[:, :, :H, :W]


def _reference(flow, depth):
    """Pure-numpy reference matching the CUDA kernels (scatter + average)."""
    flow = np.asarray(flow, dtype=np.float32)
    depth = np.asarray(depth, dtype=np.float32)
    N, _, H, W = flow.shape
    out = np.zeros((N, 2, H, W), np.float32)
    cnt = np.zeros((N, 1, H, W), np.float32)
    for n in range(N):
        for y in range(H):
            for x in range(W):
                fx = float(flow[n, 0, y, x])
                fy = float(flow[n, 1, y, x])
                x2 = x + fx
                y2 = y + fy
                if (x2 >= 0.0 and y2 >= 0.0 and x2 <= W - 1 and y2 <= H - 1
                        and abs(fx) < W / 2.0 and abs(fy) < H / 2.0):
                    ixL = int(x2)
                    iyT = int(y2)
                    ixR = min(ixL + 1, W - 1)
                    iyB = min(iyT + 1, H - 1)
                    t = float(depth[n, 0, y, x])
                    for (yy, xx) in ((iyT, ixL), (iyT, ixR), (iyB, ixL), (iyB, ixR)):
                        out[n, 0, yy, xx] += -fx * t
                        out[n, 1, yy, xx] += -fy * t
                        cnt[n, 0, yy, xx] += t
    mask = cnt[:, 0] > 0.0
    safe = np.where(mask, cnt[:, 0], 1.0)
    for c in range(2):
        out[:, c] = np.where(mask, out[:, c] / safe, out[:, c])
    return out


if __name__ == "__main__":
    key = jax.random.PRNGKey(0)
    k1, k2 = jax.random.split(key)
    N, H, W = 2, 16, 16
    flow = jax.random.normal(k1, (N, 2, H, W), jnp.float32) * 3.0
    depth = jax.random.uniform(k2, (N, 1, H, W), jnp.float32, minval=0.5, maxval=2.0)

    out = depth_flow_proj(flow, depth)
    jax.block_until_ready(out)

    ref = _reference(flow, depth)
    # bf16 hi/lo split MXU operands carry ~2^-17 relative error (vs f32 reference).
    np.testing.assert_allclose(np.asarray(out), ref, rtol=1e-4, atol=1e-4)
    print("KERNEL_OK")
</pallas_src>

<mosaic_0001>
module attributes {stable_mosaic.version = 11 : i64} {
  func.func @_depth_flow_proj_kernel(%arg0: i32, %arg1: i32, %arg2: i32, %arg3: memref<2xi32, #tpu.memory_space<smem>>, %arg4: memref<2xi32, #tpu.memory_space<smem>>, %arg5: memref<1x5x256xf32, #tpu.memory_space<vmem>>, %arg6: memref<1x2x16x128xf32, #tpu.memory_space<vmem>>, %arg7: memref<48x128xf32, #tpu.memory_space<vmem>>, %arg8: memref<48x256xbf16, #tpu.memory_space<vmem>>, %arg9: memref<48x256xbf16, #tpu.memory_space<vmem>>) attributes {dimension_semantics = [#tpu.dimension_semantics<parallel>, #tpu.dimension_semantics<parallel>, #tpu.dimension_semantics<arbitrary>], iteration_bounds = array<i64: 2, 1, 1>, scalar_prefetch = 2 : i64, scratch_operands = 3 : i64, tpu.core_type = #tpu.core_type<tc>, window_params = [{transform_indices = @transform_0, window_bounds = array<i64: 1, 5, 256>}, {transform_indices = @transform_1, window_bounds = array<i64: 1, 2, 16, 128>}]} {
    %c0_i32 = arith.constant 0 : i32
    %0 = arith.cmpi eq, %arg2, %c0_i32 : i32
    %1 = arith.extui %0 : i1 to i32
    %c0_i32_0 = arith.constant 0 : i32
    %2 = arith.cmpi ne, %1, %c0_i32_0 : i32
    scf.if %2 {
      %cst = arith.constant 0.000000e+00 : f32
      %19 = vector.broadcast %cst : f32 to vector<48x128xf32>
      %c0 = arith.constant 0 : index
      %c0_5 = arith.constant 0 : index
      %20 = vector.load %arg7[%c0, %c0_5] : memref<48x128xf32, #tpu.memory_space<vmem>>, vector<48x128xf32>
      tpu.vector_store %arg7[%c0, %c0_5], %19 {strides = array<i32>} : memref<48x128xf32, #tpu.memory_space<vmem>>, vector<48x128xf32>,
    } else {
    }
    %c16_i32 = arith.constant 16 : i32
    %3 = arith.muli %arg1, %c16_i32 : i32
    %c1_i32 = arith.constant 1 : i32
    %4 = arith.muli %arg0, %c1_i32 : i32
    %5 = arith.addi %4, %arg2 : i32
    %6 = arith.index_cast %5 : i32 to index
    %7 = memref.load %arg3[%6] : memref<2xi32, #tpu.memory_space<smem>>
    %8 = arith.index_cast %5 : i32 to index
    %9 = memref.load %arg4[%8] : memref<2xi32, #tpu.memory_space<smem>>
    %10 = arith.cmpi sge, %9, %3 : i32
    %c16_i32_1 = arith.constant 16 : i32
    %11 = arith.addi %3, %c16_i32_1 : i32
    %12 = arith.cmpi slt, %7, %11 : i32
    %13 = arith.andi %10, %12 : i1
    %14 = arith.extui %13 : i1 to i32
    %c0_i32_2 = arith.constant 0 : i32
    %15 = arith.cmpi ne, %14, %c0_i32_2 : i32
    scf.if %15 {
      %c0 = arith.constant 0 : index
      %c0_5 = arith.constant 0 : index
      %c0_6 = arith.constant 0 : index
      %19 = vector.load %arg5[%c0, %c0_5, %c0_6] : memref<1x5x256xf32, #tpu.memory_space<vmem>>, vector<1x5x256xf32>
      %20 = vector.shape_cast %19 : vector<1x5x256xf32> to vector<5x256xf32>
      %21 = vector.extract_strided_slice %20 {offsets = [0, 0], sizes = [1, 256], strides = [1, 1]} : vector<5x256xf32> to vector<1x256xf32>
      %22 = vector.extract_strided_slice %20 {offsets = [1, 0], sizes = [1, 256], strides = [1, 1]} : vector<5x256xf32> to vector<1x256xf32>
      %23 = vector.extract_strided_slice %20 {offsets = [2, 0], sizes = [1, 256], strides = [1, 1]} : vector<5x256xf32> to vector<1x256xf32>
      %24 = vector.extract_strided_slice %20 {offsets = [3, 0], sizes = [1, 256], strides = [1, 1]} : vector<5x256xf32> to vector<1x256xf32>
      %25 = vector.extract_strided_slice %20 {offsets = [4, 0], sizes = [1, 256], strides = [1, 1]} : vector<5x256xf32> to vector<1x256xf32>
      %26 = arith.addf %24, %21 : vector<1x256xf32>
      %27 = arith.addf %25, %22 : vector<1x256xf32>
      %cst = arith.constant 0.000000e+00 : f32
      %28 = vector.broadcast %cst : f32 to vector<1x256xf32>
      %29 = arith.cmpf oge, %26, %28 : vector<1x256xf32>
      %cst_7 = arith.constant 0.000000e+00 : f32
      %30 = vector.broadcast %cst_7 : f32 to vector<1x256xf32>
      %31 = arith.cmpf oge, %27, %30 : vector<1x256xf32>
      %32 = arith.andi %29, %31 : vector<1x256xi1>
      %cst_8 = arith.constant 1.500000e+01 : f32
      %33 = vector.broadcast %cst_8 : f32 to vector<1x256xf32>
      %34 = arith.cmpf ole, %26, %33 : vector<1x256xf32>
      %35 = arith.andi %32, %34 : vector<1x256xi1>
      %cst_9 = arith.constant 1.500000e+01 : f32
      %36 = vector.broadcast %cst_9 : f32 to vector<1x256xf32>
      %37 = arith.cmpf ole, %27, %36 : vector<1x256xf32>
      %38 = arith.andi %35, %37 : vector<1x256xi1>
      %39 = math.absf %21 : vector<1x256xf32>
      %cst_10 = arith.constant 8.000000e+00 : f32
      %40 = vector.broadcast %cst_10 : f32 to vector<1x256xf32>
      %41 = arith.cmpf olt, %39, %40 : vector<1x256xf32>
      %42 = arith.andi %38, %41 : vector<1x256xi1>
      %43 = math.absf %22 : vector<1x256xf32>
      %cst_11 = arith.constant 8.000000e+00 : f32
      %44 = vector.broadcast %cst_11 : f32 to vector<1x256xf32>
      %45 = arith.cmpf olt, %43, %44 : vector<1x256xf32>
      %46 = arith.andi %42, %45 : vector<1x256xi1>
      %cst_12 = arith.constant 0.000000e+00 : f32
      %47 = vector.broadcast %cst_12 : f32 to vector<1x256xf32>
      %48 = arith.select %46, %23, %47 : vector<1x256xi1>, vector<1x256xf32>
      %49 = math.floor %26 : vector<1x256xf32>
      %50 = arith.fptosi %49 : vector<1x256xf32> to vector<1x256xi32>
      %c0_i32_13 = arith.constant 0 : i32
      %c15_i32 = arith.constant 15 : i32
      %51 = vector.broadcast %c0_i32_13 : i32 to vector<1x256xi32>
      %52 = arith.maxsi %51, %50 : vector<1x256xi32>
      %53 = vector.broadcast %c15_i32 : i32 to vector<1x256xi32>
      %54 = arith.minsi %53, %52 : vector<1x256xi32>
      %55 = math.floor %27 : vector<1x256xf32>
      %56 = arith.fptosi %55 : vector<1x256xf32> to vector<1x256xi32>
      %c0_i32_14 = arith.constant 0 : i32
      %c15_i32_15 = arith.constant 15 : i32
      %57 = vector.broadcast %c0_i32_14 : i32 to vector<1x256xi32>
      %58 = arith.maxsi %57, %56 : vector<1x256xi32>
      %59 = vector.broadcast %c15_i32_15 : i32 to vector<1x256xi32>
      %60 = arith.minsi %59, %58 : vector<1x256xi32>
      %c1_i32_16 = arith.constant 1 : i32
      %61 = vector.broadcast %c1_i32_16 : i32 to vector<1x256xi32>
      %62 = arith.addi %54, %61 : vector<1x256xi32>
      %c15_i32_17 = arith.constant 15 : i32
      %63 = vector.broadcast %c15_i32_17 : i32 to vector<1x256xi32>
      %64 = arith.minsi %62, %63 : vector<1x256xi32>
      %c1_i32_18 = arith.constant 1 : i32
      %65 = vector.broadcast %c1_i32_18 : i32 to vector<1x256xi32>
      %66 = arith.addi %60, %65 : vector<1x256xi32>
      %c15_i32_19 = arith.constant 15 : i32
      %67 = vector.broadcast %c15_i32_19 : i32 to vector<1x256xi32>
      %68 = arith.minsi %66, %67 : vector<1x256xi32>
      %69 = tpu.iota {dimensions = array<i32: 0>} : vector<128x256xi32>
      %70 = vector.broadcast %54 : vector<1x256xi32> to vector<128x256xi32>
      %71 = arith.cmpi eq, %69, %70 : vector<128x256xi32>
      %72 = arith.extui %71 : vector<128x256xi1> to vector<128x256xi32>
      %73 = arith.sitofp %72 : vector<128x256xi32> to vector<128x256xf32>
      %74 = vector.broadcast %64 : vector<1x256xi32> to vector<128x256xi32>
      %75 = arith.cmpi eq, %69, %74 : vector<128x256xi32>
      %76 = arith.extui %75 : vector<128x256xi1> to vector<128x256xi32>
      %77 = arith.sitofp %76 : vector<128x256xi32> to vector<128x256xf32>
      %78 = arith.addf %73, %77 : vector<128x256xf32>
      %79 = arith.truncf %78 : vector<128x256xf32> to vector<128x256xbf16>
      %80 = tpu.iota {dimensions = array<i32: 0>} : vector<16x256xi32>
      %81 = vector.broadcast %3 : i32 to vector<16x256xi32>
      %82 = arith.addi %80, %81 : vector<16x256xi32>
      %83 = vector.broadcast %60 : vector<1x256xi32> to vector<16x256xi32>
      %84 = arith.cmpi eq, %82, %83 : vector<16x256xi32>
      %85 = arith.extui %84 : vector<16x256xi1> to vector<16x256xi32>
      %86 = arith.sitofp %85 : vector<16x256xi32> to vector<16x256xf32>
      %87 = vector.broadcast %68 : vector<1x256xi32> to vector<16x256xi32>
      %88 = arith.cmpi eq, %82, %87 : vector<16x256xi32>
      %89 = arith.extui %88 : vector<16x256xi1> to vector<16x256xi32>
      %90 = arith.sitofp %89 : vector<16x256xi32> to vector<16x256xf32>
      %91 = arith.addf %86, %90 : vector<16x256xf32>
      %92 = vector.broadcast %48 : vector<1x256xf32> to vector<16x256xf32>
      %93 = arith.mulf %91, %92 : vector<16x256xf32>
      %cst_20 = arith.constant 0.000000e+00 : f32
      %94 = vector.broadcast %cst_20 : f32 to vector<1x256xf32>
      %95 = arith.subf %94, %21 : vector<1x256xf32>
      %96 = vector.broadcast %95 : vector<1x256xf32> to vector<16x256xf32>
      %97 = arith.mulf %96, %93 : vector<16x256xf32>
      %cst_21 = arith.constant 0.000000e+00 : f32
      %98 = vector.broadcast %cst_21 : f32 to vector<1x256xf32>
      %99 = arith.subf %98, %22 : vector<1x256xf32>
      %100 = vector.broadcast %99 : vector<1x256xf32> to vector<16x256xf32>
      %101 = arith.mulf %100, %93 : vector<16x256xf32>
      %102 = arith.truncf %97 : vector<16x256xf32> to vector<16x256xbf16>
      %103 = arith.extf %102 : vector<16x256xbf16> to vector<16x256xf32>
      %104 = arith.subf %97, %103 : vector<16x256xf32>
      %105 = arith.truncf %104 : vector<16x256xf32> to vector<16x256xbf16>
      %c0_22 = arith.constant 0 : index
      %c0_23 = arith.constant 0 : index
      %106 = vector.load %arg8[%c0_22, %c0_23] : memref<48x256xbf16, #tpu.memory_space<vmem>>, vector<16x256xbf16>
      tpu.vector_store %arg8[%c0_22, %c0_23], %102 {strides = array<i32>} : memref<48x256xbf16, #tpu.memory_space<vmem>>, vector<16x256xbf16>,
      %c0_24 = arith.constant 0 : index
      %c0_25 = arith.constant 0 : index
      %107 = vector.load %arg9[%c0_24, %c0_25] : memref<48x256xbf16, #tpu.memory_space<vmem>>, vector<16x256xbf16>
      tpu.vector_store %arg9[%c0_24, %c0_25], %105 {strides = array<i32>} : memref<48x256xbf16, #tpu.memory_space<vmem>>, vector<16x256xbf16>,
      %108 = arith.truncf %101 : vector<16x256xf32> to vector<16x256xbf16>
      %109 = arith.extf %108 : vector<16x256xbf16> to vector<16x256xf32>
      %110 = arith.subf %101, %109 : vector<16x256xf32>
      %111 = arith.truncf %110 : vector<16x256xf32> to vector<16x256xbf16>
      %c16 = arith.constant 16 : index
      %c0_26 = arith.constant 0 : index
      %112 = vector.load %arg8[%c16, %c0_26] : memref<48x256xbf16, #tpu.memory_space<vmem>>, vector<16x256xbf16>
      tpu.vector_store %arg8[%c16, %c0_26], %108 {strides = array<i32>} : memref<48x256xbf16, #tpu.memory_space<vmem>>, vector<16x256xbf16>,
      %c16_27 = arith.constant 16 : index
      %c0_28 = arith.constant 0 : index
      %113 = vector.load %arg9[%c16_27, %c0_28] : memref<48x256xbf16, #tpu.memory_space<vmem>>, vector<16x256xbf16>
      tpu.vector_store %arg9[%c16_27, %c0_28], %111 {strides = array<i32>} : memref<48x256xbf16, #tpu.memory_space<vmem>>, vector<16x256xbf16>,
      %114 = arith.truncf %93 : vector<16x256xf32> to vector<16x256xbf16>
      %115 = arith.extf %114 : vector<16x256xbf16> to vector<16x256xf32>
      %116 = arith.subf %93, %115 : vector<16x256xf32>
      %117 = arith.truncf %116 : vector<16x256xf32> to vector<16x256xbf16>
      %c32 = arith.constant 32 : index
      %c0_29 = arith.constant 0 : index
      %118 = vector.load %arg8[%c32, %c0_29] : memref<48x256xbf16, #tpu.memory_space<vmem>>, vector<16x256xbf16>
      tpu.vector_store %arg8[%c32, %c0_29], %114 {strides = array<i32>} : memref<48x256xbf16, #tpu.memory_space<vmem>>, vector<16x256xbf16>,
      %c32_30 = arith.constant 32 : index
      %c0_31 = arith.constant 0 : index
      %119 = vector.load %arg9[%c32_30, %c0_31] : memref<48x256xbf16, #tpu.memory_space<vmem>>, vector<16x256xbf16>
      tpu.vector_store %arg9[%c32_30, %c0_31], %117 {strides = array<i32>} : memref<48x256xbf16, #tpu.memory_space<vmem>>, vector<16x256xbf16>,
      %c0_32 = arith.constant 0 : index
      %c0_33 = arith.constant 0 : index
      %120 = vector.load %arg7[%c0_32, %c0_33] : memref<48x128xf32, #tpu.memory_space<vmem>>, vector<48x128xf32>
      %c0_34 = arith.constant 0 : index
      %c0_35 = arith.constant 0 : index
      %121 = vector.load %arg8[%c0_34, %c0_35] : memref<48x256xbf16, #tpu.memory_space<vmem>>, vector<48x256xbf16>
      %cst_36 = arith.constant dense<0.000000e+00> : vector<48x128xf32>
      %122 = tpu.matmul %121, %79, %cst_36 {dimension_numbers = #tpu.dot_dimension_numbers<[1], [1], [0], [0], [0, 0, 1, 0], [], []>} : vector<48x256xbf16>, vector<128x256xbf16>, vector<48x128xf32> -> vector<48x128xf32>
      %c0_37 = arith.constant 0 : index
      %c0_38 = arith.constant 0 : index
      %123 = vector.load %arg9[%c0_37, %c0_38] : memref<48x256xbf16, #tpu.memory_space<vmem>>, vector<48x256xbf16>
      %cst_39 = arith.constant dense<0.000000e+00> : vector<48x128xf32>
      %124 = tpu.matmul %123, %79, %cst_39 {dimension_numbers = #tpu.dot_dimension_numbers<[1], [1], [0], [0], [0, 0, 1, 0], [], []>} : vector<48x256xbf16>, vector<128x256xbf16>, vector<48x128xf32> -> vector<48x128xf32>
      %125 = arith.addf %122, %124 : vector<48x128xf32>
      %126 = arith.addf %120, %125 : vector<48x128xf32>
      %c0_40 = arith.constant 0 : index
      %c0_41 = arith.constant 0 : index
      %127 = vector.load %arg7[%c0_40, %c0_41] : memref<48x128xf32, #tpu.memory_space<vmem>>, vector<48x128xf32>
      tpu.vector_store %arg7[%c0_40, %c0_41], %126 {strides = array<i32>} : memref<48x128xf32, #tpu.memory_space<vmem>>, vector<48x128xf32>,
    } else {
    }
    %c0_i32_3 = arith.constant 0 : i32
    %16 = arith.cmpi eq, %arg2, %c0_i32_3 : i32
    %17 = arith.extui %16 : i1 to i32
    %c0_i32_4 = arith.constant 0 : i32
    %18 = arith.cmpi ne, %17, %c0_i32_4 : i32
    scf.if %18 {
      %c0 = arith.constant 0 : index
      %c0_5 = arith.constant 0 : index
      %19 = vector.load %arg7[%c0, %c0_5] : memref<48x128xf32, #tpu.memory_space<vmem>>, vector<48x128xf32>
      %20 = vector.extract_strided_slice %19 {offsets = [0, 0], sizes = [16, 128], strides = [1, 1]} : vector<48x128xf32> to vector<16x128xf32>
      %21 = vector.extract_strided_slice %19 {offsets = [16, 0], sizes = [16, 128], strides = [1, 1]} : vector<48x128xf32> to vector<16x128xf32>
      %22 = vector.extract_strided_slice %19 {offsets = [32, 0], sizes = [16, 128], strides = [1, 1]} : vector<48x128xf32> to vector<16x128xf32>
      %cst = arith.constant 0.000000e+00 : f32
      %23 = vector.broadcast %cst : f32 to vector<16x128xf32>
      %24 = arith.cmpf ogt, %22, %23 : vector<16x128xf32>
      %cst_6 = arith.constant 1.000000e+00 : f32
      %25 = vector.broadcast %cst_6 : f32 to vector<16x128xf32>
      %26 = arith.select %24, %22, %25 : vector<16x128xi1>, vector<16x128xf32>
      %27 = tpu.reciprocal %26 : vector<16x128xf32> -> vector<16x128xf32>
      %28 = arith.mulf %20, %27 : vector<16x128xf32>
      %c0_7 = arith.constant 0 : index
      %c0_8 = arith.constant 0 : index
      %c0_9 = arith.constant 0 : index
      %c0_10 = arith.constant 0 : index
      %29 = vector.load %arg6[%c0_7, %c0_8, %c0_9, %c0_10] : memref<1x2x16x128xf32, #tpu.memory_space<vmem>>, vector<1x1x16x128xf32>
      %30 = vector.shape_cast %29 : vector<1x1x16x128xf32> to vector<16x128xf32>
      %31 = vector.shape_cast %28 : vector<16x128xf32> to vector<1x1x16x128xf32>
      tpu.vector_store %arg6[%c0_7, %c0_8, %c0_9, %c0_10], %31 {strides = array<i32>} : memref<1x2x16x128xf32, #tpu.memory_space<vmem>>, vector<1x1x16x128xf32>,
      %32 = arith.mulf %21, %27 : vector<16x128xf32>
      %c0_11 = arith.constant 0 : index
      %c1 = arith.constant 1 : index
      %c0_12 = arith.constant 0 : index
      %c0_13 = arith.constant 0 : index
      %33 = vector.load %arg6[%c0_11, %c1, %c0_12, %c0_13] : memref<1x2x16x128xf32, #tpu.memory_space<vmem>>, vector<1x1x16x128xf32>
      %34 = vector.shape_cast %33 : vector<1x1x16x128xf32> to vector<16x128xf32>
      %35 = vector.shape_cast %32 : vector<16x128xf32> to vector<1x1x16x128xf32>
      tpu.vector_store %arg6[%c0_11, %c1, %c0_12, %c0_13], %35 {strides = array<i32>} : memref<1x2x16x128xf32, #tpu.memory_space<vmem>>, vector<1x1x16x128xf32>,
    } else {
    }
    return
  }
  func.func @transform_0(%arg0: i32, %arg1: i32, %arg2: i32, %arg3: memref<2xi32, #tpu.memory_space<smem>>, %arg4: memref<2xi32, #tpu.memory_space<smem>>) -> (i32, i32, i32) {
    %c0_i32 = arith.constant 0 : i32
    %c0_i32_0 = arith.constant 0 : i32
    return %arg0, %c0_i32, %arg2 : i32, i32, i32
  }
  func.func @transform_1(%arg0: i32, %arg1: i32, %arg2: i32, %arg3: memref<2xi32, #tpu.memory_space<smem>>, %arg4: memref<2xi32, #tpu.memory_space<smem>>) -> (i32, i32, i32, i32) {
    %c0_i32 = arith.constant 0 : i32
    %c0_i32_0 = arith.constant 0 : i32
    %c0_i32_1 = arith.constant 0 : i32
    return %arg0, %c0_i32, %arg1, %c0_i32_0 : i32, i32, i32, i32
  }
}

</mosaic_0001>

<bundles_post_ra>
// kernel: tpu_custom_call.1
= control target key start
LH: loop header
LB: loop body
LE: loop exit
PB: predicated region body
PF: predicated region fallthrough
CT: control target
= control target key end

     0   :  { %s1827_s0 = inlined_call_operand.vmem [shape: s32[2], index: 0, kind: input, shape index: {}]   ;;  %s1828_s2 = inlined_call_operand.vmem [shape: f32[2,5,256], index: 2, kind: input, shape index: {}]   ;;  %s1829_s3 = inlined_call_operand.hbm [shape: f32[2,2,16,128], index: 3, kind: output, shape index: {}]   ;;  %s1830_s1 = inlined_call_operand.vmem [shape: s32[2], index: 1, kind: input, shape index: {}]  }
   0x1   :  { %s8_s14 = sshll.u32 %s1827_s0, 4  ;;  %s12_s17 = sshll.u32 %s1830_s1, 4  ;;  %s9_s14 = int_to_ptr.vmem [resolvable:$true] %s8_s14  ;;  %s13_s17 = int_to_ptr.vmem [resolvable:$true] %s12_s17 }
   0x2   :  { %s1092_s18 = scalar_lea.vmem %s9_s14, 16  ;;  %p1097_p1 = scmp.lt.s32.totalorder %s9_s14, %s9_s14 }
   0x3   :  { %p1093_p0 = scmp.ne.s32.totalorder %s9_s14, %s1092_s18  ;;  %p1098_p2 = scmp.lt.s32.totalorder %s1092_s18, %s1092_s18 }
   0x5   :  { %p1099_p3 = por %p1098_p2, %p1097_p1 }
   0x7   :  { %p1100_p4 = pnand %p1099_p3, %p1093_p0 }
   0x9   :  { %1103 = shalt.err (!%p1100_p4)  }
   0xa   :  { %s1198_s19 = smov [#allocation6]   ;;  %s1104_s20 = scalar_lea.vmem %s13_s17, 16 }
   0xb   :  { %11 = dma.vmem_to_smem %s9_s14, 16, %s1198_s19, [#allocation5] }
   0xc   :  { %p1105_p5 = scmp.ne.s32.totalorder %s13_s17, %s1104_s20  ;;  %p1109_p6 = scmp.lt.s32.totalorder %s13_s17, %s13_s17 }
   0xd   :  { %p1110_p7 = scmp.lt.s32.totalorder %s1104_s20, %s1104_s20 }
   0xf   :  { %p1111_p8 = por %p1110_p7, %p1109_p6 }
  0x11   :  { %p1112_p9 = pnand %p1111_p8, %p1105_p5 }
  0x13   :  { %1115 = shalt.err (!%p1112_p9)  }
  0x14   :  { %s1199_s0 = smov [#allocation7]  }
  0x15   :  { %15 = dma.vmem_to_smem %s13_s17, 16, %s1199_s0, [#allocation5] }
  0x16   :  { %1168 = dma.done.wait [#allocation5], 32 }
  0x17   :  { %1169 = vsyncadd [#allocation5], 4294967264 }
  0x18   :  { %17 = sfence }
  0x19   :  { %18 = vsyncpa [#allocation9], 0 }
  0x1a   :  { %20 = vsyncpa [#allocation9 + $0x1], 0  ;;  %s1232_s1 = smov 0   ;;  %s1234_s21 = smov 0  }
  0x1b   :  { %s1236_s22 = smov 0   ;;  %s1238_s23 = smov 0  }
  0x1c   :  { %s1240_s24 = smov 0   ;;  %s1242_s25 = smov 0  }
  0x1d LB: > { %s933_s26 = sadd.s32 4294967295, %s1196_s25   ;;  %s934_s27 = sadd.s32 4294967294, %s1196_s25   ;;  %s1196_s25 = sphi %s1242_s25, %s26_s25   ;;  %s1192_s24 = sphi %s1240_s24, %s1855_s24   ;;  %s1188_s23 = sphi %s1238_s23, %s1854_s23   ;;  %s1184_s22 = sphi %s1236_s22, %s1853_s22   ;;  %s1180_s21 = sphi %s1234_s21, %s1852_s21   ;;  %s1176_s1 = sphi %s1232_s1, %s1851_s1  }
  0x1e   : > { %s45_s28 = sadd.s32 1, %s1192_s24  ;;  %s82_s29 = sadd.s32 1, %s1184_s22 }
  0x1f   : > { %p47_p10 = scmp.ge.s32.totalorder %s45_s28, 2  ;;  %p92_p11 = scmp.ne.s32.totalorder %s1184_s22, %s1180_s21 }
  0x20   : > { %p93_p12 = scmp.eq.s32.totalorder %s933_s26, 1  ;;  %p98_p13 = scmp.ne.s32.totalorder %s1180_s21, %s1176_s1 }
  0x21   : > { %s1857_s28 = smov (%p47_p10, %s45_s28), 0  ;;  %p99_p1 = scmp.eq.s32.totalorder %s934_s27, 1 }
  0x22   : > { %p1272_p0 = por %p93_p12, %p92_p11  ;;  %s77_s4 = ssub.s32 %s1192_s24, %s1857_s28 }
  0x23   : > { %p937_p2 = scmp.ge.s32.totalorder %s1196_s25, 1  ;;  %p80_p3 = scmp.eq.s32.totalorder %s77_s4, 0 }
  0x24   : > { %p1279_p4 = por %p99_p1, %p98_p13  ;;  %p130_p5 = scmp.lt.s32.totalorder %s1196_s25, 3 }
  0x25   : > { %s1285_s6 = scalar_select %p80_p3, %s1184_s22, %s82_s29  }
  0x26   : > { %p131_p6 = pnand %p937_p2, %p130_p5 }
  0x27   : > { %s151_s7 = sand.u32 (!%p131_p6), 1, %s1180_s21   ;;  %p155_p7 = scmp.lt.s32.totalorder (!%p131_p6), %s1188_s23, 1  ;;  %v1200_v0 = vmov (!%p131_p6), 0.0  }
  0x28   : > { %134 = sbr.rel (%p131_p6) target bundleno = 415 (0x19f), region = 24  ;;  %s938_s8 = sshll.u32 (!%p131_p6), %s151_s7, 5  ;;  %170 = vst [vmem:[#allocation2] sm:$0xff] (!%p131_p6), %v1200_v0  ;;  %171 = vst [vmem:[#allocation2 + $0x8] sm:$0xff] (!%p131_p6), %v1200_v0 }
  0x29   : > { %172 = vst [vmem:[#allocation2 + $0x10] sm:$0xff] (!%p131_p6), %v1200_v0  ;;  %173 = vst [vmem:[#allocation2 + $0x18] sm:$0xff] (!%p131_p6), %v1200_v0  ;;  %s178_s9 = sld [smem:[#allocation6 + %s1188_s23]] (!%p131_p6)  ;;  %s1297_s16 = scalar_lea.vmem (!%p131_p6), [#allocation8], %s938_s8 }
  0x2a   : > { %174 = vst [vmem:[#allocation2 + $0x20] sm:$0xff] (!%p131_p6), %v1200_v0  ;;  %175 = vst [vmem:[#allocation2 + $0x28] sm:$0xff] (!%p131_p6), %v1200_v0  ;;  %s179_s10 = sld [smem:[#allocation7 + %s1188_s23]] (!%p131_p6) }
  0x2f   : > { %s156_s11 = scalar_select %p155_p7, %s1188_s23, 1 }
  0x30   : > { %p182_p8 = scmp.lt.s32.totalorder %s178_s9, 16  ;;  %p180_p9 = scmp.ge.s32.totalorder %s179_s10, 0 }
  0x31   : > { %s1020_s12 = sshll.u32 %s156_s11, 4 }
  0x32   : > { %s162_s15 = scalar_lea.vmem %s1828_s2, %s1020_s12  ;;  %p183_p10 = pnand %p182_p8, %p180_p9 }
  0x33   : > { %v1299_v1 = vld [vmem:[%s162_s15 + $0x8] sm:$0x1f] (!%p183_p10)  ;;  %v261_v2 = vlaneseq (!%p183_p10)  ;;  %v1301_v3 = vld [vmem:[%s162_s15] sm:$0x1f] (!%p183_p10)  ;;  %v1201_v39 = vmov (!%p183_p10), 0   ;;  %v1202_v56 = vmov (!%p183_p10), 0.0  }
  0x34   : > { %186 = sbr.rel (%p183_p10) target bundleno = 378 (0x17a), region = 32  ;;  %v192_v4 = vrot.slane (!%p183_p10), %v1299_v1, 5  ;;  %v191_v5 = vrot.slane (!%p183_p10), %v1301_v3, 5  ;;  %v220_v7 = vand.u32 (!%p183_p10), 2147483647, %v1299_v1  ;;  %v238_v10 = vrot.slane (!%p183_p10), %v1299_v1, 7 }
  0x35   : > { %v1305_v6 = vshrl.u32 (!%p183_p10), %v261_v2, 7  ;;  %v594_v11 = vsub.f32 (!%p183_p10), 0.0, %v1299_v1  ;;  %v219_v14 = vand.u32 (!%p183_p10), 2147483647, %v1301_v3  ;;  %v237_v15 = vrot.slane (!%p183_p10), %v1301_v3, 7 }
  0x36   : > { %v1309_v8 = vadd.f32 (!%p183_p10), %v192_v4, %v1299_v1  ;;  %v1312_v9 = vadd.f32 (!%p183_p10), %v191_v5, %v1301_v3  ;;  %vm1326_vm0 = vcmp.lt.f32.partialorder (!%p183_p10), %v220_v7, 8.0  ;;  %v593_v19 = vsub.f32 (!%p183_p10), 0.0, %v1301_v3 }
  0x37   : > { %v1321_v16 = vadd.s32 (!%p183_p10), 8, %v1305_v6  ;;  %v1324_v17 = vsub.s32 (!%p183_p10), 3, %v1305_v6  ;;  %v1332_v22 = vadd.s32 (!%p183_p10), 16, %v1305_v6  ;;  %v1335_v23 = vadd.s32 (!%p183_p10), 24, %v1305_v6 }
  0x38   : > { %v244_v12 = vfloor.f32 (!%p183_p10), %v1309_v8  ;;  %v243_v13 = vfloor.f32 (!%p183_p10), %v1312_v9  ;;  %v1338_v24 = vadd.s32 (!%p183_p10), 32, %v1305_v6  ;;  %v1341_v25 = vadd.s32 (!%p183_p10), 40, %v1305_v6 }
  0x39   : > { %v1344_v26 = vadd.s32 (!%p183_p10), 48, %v1305_v6  ;;  %v1347_v27 = vadd.s32 (!%p183_p10), 56, %v1305_v6  ;;  %v1350_v30 = vadd.s32 (!%p183_p10), 64, %v1305_v6  ;;  %vm198_vm1 = vcmp.ge.f32.partialorder (!%p183_p10), %v1309_v8, 0.0 }
  0x3a   : > { %v1024_v20 = vtrunc.f32 (!%p183_p10), %v244_v12  ;;  %v1022_v21 = vtrunc.f32 (!%p183_p10), %v243_v13  ;;  %v1354_v31 = vadd.s32 (!%p183_p10), 72, %v1305_v6  ;;  %v1357_v32 = vadd.s32 (!%p183_p10), 80, %v1305_v6 }
  0x3b   : > { %v1360_v33 = vadd.s32 88, %v1305_v6  ;;  %vm208_vm2 = vcmp.le.f32.partialorder %v1309_v8, 15.0  ;;  %v1364_v34 = vadd.s32 96, %v1305_v6  ;;  %v1367_v35 = vadd.s32 104, %v1305_v6 }
  0x3c   : > { %v1025_v28 = vcvt.f32.s32 %v1024_v20  ;;  %v1023_v29 = vcvt.f32.s32 %v1022_v21  ;;  %v1370_v38 = vadd.s32 112, %v1305_v6  ;;  %v1375_v40 = vsel %vm198_vm1, 1, %v1201_v39 }
  0x3d   : > { %v1380_v41 = vsel %vm208_vm2, 1, %v1201_v39  ;;  %v1385_v42 = vsel %vm1326_vm0, 1, %v1201_v39  ;;  %v1392_v45 = vadd.s32 120, %v1305_v6  ;;  %v1395_v46 = vsub.s32 4, %v1305_v6 }
  0x3e   : > { %vm249_vm3 = vcmp.gt.s32.totalorder %v1025_v28, 0  ;;  %vm247_vm4 = vcmp.gt.s32.totalorder %v1023_v29, 0  ;;  %v202_v51 = vrot.slane %v1375_v40, 1  ;;  %v214_v52 = vrot.slane %v1380_v41, 1 }
  0x3f   : > { %v250_v36 = vsel %vm249_vm3, %v1025_v28, 0  ;;  %v248_v37 = vsel %vm247_vm4, %v1023_v29, 0  ;;  %v226_v53 = vrot.slane %v1385_v42, 5  ;;  %v232_v54 = vrot.slane %v1385_v42, 6 }
  0x40   : > { %vm253_vm5 = vcmp.lt.s32.totalorder %v250_v36, 15  ;;  %vm251_vm6 = vcmp.lt.s32.totalorder %v248_v37, 15 }
  0x41   : > { %v1387_v43 = vsel %vm253_vm5, %v250_v36, 15  ;;  %v1389_v44 = vsel %vm251_vm6, %v248_v37, 15 }
  0x42   : > { %v256_v47 = vadd.s32 1, %v1387_v43  ;;  %v1400_v48 = vrot.slane %v1387_v43, %v1324_v17  ;;  %v255_v49 = vadd.s32 1, %v1389_v44  ;;  %v1405_v50 = vrot.slane %v1389_v44, %v1324_v17 }
  0x44   : > { %vm259_vm7 = vcmp.lt.s32.totalorder %v256_v47, 15  ;;  %vm287_vm8 = vcmp.eq.s32.totalorder %v1305_v6, %v1400_v48  ;;  %vm289_vm9 = vcmp.eq.s32.totalorder %v1321_v16, %v1400_v48  ;;  %vm257_vm10 = vcmp.lt.s32.totalorder %v255_v49, 15 }
  0x45   : > { %v1415_v55 = vsel %vm259_vm7, %v256_v47, 15  ;;  %v942_v57 = vsel %vm287_vm8, 1.0, %v1202_v56  ;;  %v944_v58 = vsel %vm289_vm9, 1.0, %v1202_v56  ;;  %v1419_v59 = vsel %vm257_vm10, %v255_v49, 15 }
  0x46   : > { %v1423_v60 = vrot.slane %v1415_v55, %v1324_v17  ;;  %vm286_vm11 = vcmp.eq.s32.totalorder %v1305_v6, %v1405_v50  ;;  %vm288_vm12 = vcmp.eq.s32.totalorder %v1321_v16, %v1405_v50  ;;  %v1431_v61 = vrot.slane %v1419_v59, %v1324_v17 }
  0x47   : > { %v941_v62 = vsel %vm286_vm11, 1.0, %v1202_v56  ;;  %v943_v63 = vsel %vm288_vm12, 1.0, %v1202_v56  ;;  %vm291_vm13 = vcmp.eq.s32.totalorder %v1332_v22, %v1400_v48  ;;  %vm293_vm14 = vcmp.eq.s32.totalorder %v1335_v23, %v1400_v48 }
  0x48   : > { %vm391_vm15 = vcmp.eq.s32.totalorder %v1305_v6, %v1423_v60  ;;  %vm393_vm0 = vcmp.eq.s32.totalorder %v1321_v16, %v1423_v60  ;;  %vm390_vm3 = vcmp.eq.s32.totalorder %v1305_v6, %v1431_v61  ;;  %vm392_vm4 = vcmp.eq.s32.totalorder %v1321_v16, %v1431_v61 }
  0x49   : > { %v974_v0 = vsel %vm391_vm15, 1.0, %v1202_v56  ;;  %v976_v2 = vsel %vm393_vm0, 1.0, %v1202_v56  ;;  %v973_v4 = vsel %vm390_vm3, 1.0, %v1202_v56  ;;  %v975_v5 = vsel %vm392_vm4, 1.0, %v1202_v56 }
  0x4a   : > { %v487_v7 = vadd.f32 %v974_v0, %v942_v57  ;;  %v489_v12 = vadd.f32 %v976_v2, %v944_v58  ;;  %v486_v13 = vadd.f32 %v973_v4, %v941_v62  ;;  %v488_v18 = vadd.f32 %v975_v5, %v943_v63 }
  0x4b   : > { %v946_v20 = vsel %vm291_vm13, 1.0, %v1202_v56  ;;  %v948_v21 = vsel %vm293_vm14, 1.0, %v1202_v56  ;;  %vm395_vm5 = vcmp.eq.s32.totalorder %v1332_v22, %v1423_v60  ;;  %vm397_vm6 = vcmp.eq.s32.totalorder %v1335_v23, %v1423_v60 }
  0x4c   : > { %v519_v28 = vpack.c.bf16 %v489_v12, %v487_v7  ;;  %v518_v29 = vpack.c.bf16 %v488_v18, %v486_v13  ;;  %v978_v36 = vsel %vm395_vm5, 1.0, %v1202_v56  ;;  %v980_v37 = vsel %vm397_vm6, 1.0, %v1202_v56 }
  0x4d   : > { %v491_v47 = vadd.f32 %v978_v36, %v946_v20  ;;  %v493_v49 = vadd.f32 %v980_v37, %v948_v21  ;;  %vm290_vm7 = vcmp.eq.s32.totalorder %v1332_v22, %v1405_v50  ;;  %vm292_vm8 = vcmp.eq.s32.totalorder %v1335_v23, %v1405_v50 }
  0x4e   : > { %685 = vmatprep.subr.bf16.mxu0 %v519_v28  ;;  %742 = vmatprep.subr.bf16.mxu1 %v519_v28  ;;  %v945_v57 = vsel %vm290_vm7, 1.0, %v1202_v56  ;;  %v947_v58 = vsel %vm292_vm8, 1.0, %v1202_v56  ;;  %vm394_vm9 = vcmp.eq.s32.totalorder %v1332_v22, %v1431_v61  ;;  %vm396_vm10 = vcmp.eq.s32.totalorder %v1335_v23, %v1431_v61 }
  0x4f   : > { %686 = vmatpush1.bf16.xpose.msra.mxu0 %v518_v29  ;;  %743 = vmatpush1.bf16.xpose.msra.mxu1 %v518_v29  ;;  %v521_v62 = vpack.c.bf16 %v493_v49, %v491_v47  ;;  %v977_v63 = vsel %vm394_vm9, 1.0, %v1202_v56  ;;  %v979_v0 = vsel %vm396_vm10, 1.0, %v1202_v56  ;;  %vm295_vm11 = vcmp.eq.s32.totalorder %v1338_v24, %v1400_v48 }
  0x50   : > { %v490_v2 = vadd.f32 %v977_v63, %v945_v57  ;;  %v492_v4 = vadd.f32 %v979_v0, %v947_v58  ;;  %vm297_vm12 = vcmp.eq.s32.totalorder %v1341_v25, %v1400_v48  ;;  %v950_v22 = vsel %vm295_vm11, 1.0, %v1202_v56 }
  0x51   : > { %687 = vmatprep.subr.bf16.mxu0 %v521_v62  ;;  %744 = vmatprep.subr.bf16.mxu1 %v521_v62  ;;  %v952_v23 = vsel %vm297_vm12, 1.0, %v1202_v56  ;;  %vm399_vm13 = vcmp.eq.s32.totalorder %v1338_v24, %v1423_v60  ;;  %vm401_vm14 = vcmp.eq.s32.totalorder %v1341_v25, %v1423_v60  ;;  %vm294_vm15 = vcmp.eq.s32.totalorder %v1338_v24, %v1405_v50 }
  0x52   : > { %v520_v5 = vpack.c.bf16 %v492_v4, %v490_v2  ;;  %v982_v7 = vsel %vm399_vm13, 1.0, %v1202_v56  ;;  %v984_v12 = vsel %vm401_vm14, 1.0, %v1202_v56  ;;  %vm296_vm0 = vcmp.eq.s32.totalorder %v1341_v25, %v1405_v50 }
  0x53   : > { %v495_v13 = vadd.f32 %v982_v7, %v950_v22  ;;  %v497_v18 = vadd.f32 %v984_v12, %v952_v23  ;;  %v949_v20 = vsel %vm294_vm15, 1.0, %v1202_v56  ;;  %v951_v21 = vsel %vm296_vm0, 1.0, %v1202_v56 }
  0x54   : > { %vm398_vm3 = vcmp.eq.s32.totalorder %v1338_v24, %v1431_v61  ;;  %vm400_vm4 = vcmp.eq.s32.totalorder %v1341_v25, %v1431_v61  ;;  %vm299_vm5 = vcmp.eq.s32.totalorder %v1344_v26, %v1400_v48  ;;  %vm301_vm6 = vcmp.eq.s32.totalorder %v1347_v27, %v1400_v48 }
  0x55   : > { %v523_v28 = vpack.c.bf16 %v497_v18, %v495_v13  ;;  %v981_v29 = vsel %vm398_vm3, 1.0, %v1202_v56  ;;  %v983_v36 = vsel %vm400_vm4, 1.0, %v1202_v56  ;;  %v954_v37 = vsel %vm299_vm5, 1.0, %v1202_v56 }
  0x56   : > { %v494_v47 = vadd.f32 %v981_v29, %v949_v20  ;;  %v496_v49 = vadd.f32 %v983_v36, %v951_v21  ;;  %v956_v24 = vsel %vm301_vm6, 1.0, %v1202_v56  ;;  %vm403_vm7 = vcmp.eq.s32.totalorder %v1344_v26, %v1423_v60 }
  0x57   : > { %vm1505_vm8 = vcmp.ne.s32.totalorder %v202_v51, 0  ;;  %688 = vmatpush1.bf16.xpose.msra.mxu0 %v520_v5  ;;  %745 = vmatpush1.bf16.xpose.msra.mxu1 %v520_v5  ;;  %vm405_vm9 = vcmp.eq.s32.totalorder %v1347_v27, %v1423_v60  ;;  %v986_v57 = vsel %vm403_vm7, 1.0, %v1202_v56  ;;  %vm298_vm10 = vcmp.eq.s32.totalorder %v1344_v26, %v1405_v50 }
  0x58   : > { %vm300_vm11 = vcmp.eq.s32.totalorder %v1347_v27, %v1405_v50  ;;  %689 = vmatprep.subr.bf16.mxu0 %v523_v28  ;;  %746 = vmatprep.subr.bf16.mxu1 %v523_v28  ;;  %v988_v40 = vsel %vm405_vm9, 1.0, %v1202_v56  ;;  %v499_v51 = vadd.f32 %v986_v57, %v954_v37  ;;  %v953_v58 = vsel %vm298_vm10, 1.0, %v1202_v56 }
  0x59   : > { %v1520_v62 = vrot.slane %v1387_v43, %v1395_v46  ;;  %v501_v63 = vadd.f32 %v988_v40, %v956_v24  ;;  %v955_v0 = vsel %vm300_vm11, 1.0, %v1202_v56  ;;  %vm402_vm12 = vcmp.eq.s32.totalorder %v1344_v26, %v1431_v61 }
  0x5a   : > { %vm404_vm13 = vcmp.eq.s32.totalorder %v1347_v27, %v1431_v61  ;;  %v985_v2 = vsel %vm402_vm12, 1.0, %v1202_v56  ;;  %vm303_vm14 = vcmp.eq.s32.totalorder %v1350_v30, %v1400_v48  ;;  %vm305_vm15 = vcmp.eq.s32.totalorder %v1354_v31, %v1400_v48 }
  0x5b   : > { %v987_v4 = vsel %vm404_vm13, 1.0, %v1202_v56  ;;  %v522_v43 = vpack.c.bf16 %v496_v49, %v494_v47  ;;  %v525_v22 = vpack.c.bf16 %v501_v63, %v499_v51  ;;  %v498_v23 = vadd.f32 %v985_v2, %v953_v58  ;;  %vm206_vm13 = vmand %vm198_vm1, %vm1505_vm8 }
  0x5c   : > { %v958_v5 = vsel %vm303_vm14, 1.0, %v1202_v56  ;;  %v960_v26 = vsel %vm305_vm15, 1.0, %v1202_v56  ;;  %vm407_vm0 = vcmp.eq.s32.totalorder %v1350_v30, %v1423_v60  ;;  %vm409_vm3 = vcmp.eq.s32.totalorder %v1354_v31, %v1423_v60 }
  0x5d   : > { %vm302_vm4 = vcmp.eq.s32.totalorder %v1350_v30, %v1405_v50  ;;  %vm1543_vm5 = vcmp.ne.s32.totalorder %v214_v52, 0  ;;  %v500_v7 = vadd.f32 %v987_v4, %v955_v0  ;;  %v990_v12 = vsel %vm407_vm0, 1.0, %v1202_v56 }
  0x5e   : > { %v992_v13 = vsel %vm409_vm3, 1.0, %v1202_v56  ;;  %vm304_vm6 = vcmp.eq.s32.totalorder %v1354_v31, %v1405_v50  ;;  %v503_v18 = vadd.f32 %v990_v12, %v958_v5  ;;  %v957_v21 = vsel %vm302_vm4, 1.0, %v1202_v56  ;;  %vm1597_vm4 = vmand %vm206_vm13, %vm208_vm2 }
  0x5f   : > { %v505_v20 = vadd.f32 %v992_v13, %v960_v26  ;;  %v959_v28 = vsel %vm304_vm6, 1.0, %v1202_v56  ;;  %690 = vmatpush1.bf16.xpose.msra.mxu0 %v522_v43  ;;  %747 = vmatpush1.bf16.xpose.msra.mxu1 %v522_v43  ;;  %vm406_vm7 = vcmp.eq.s32.totalorder %v1350_v30, %v1431_v61  ;;  %vm408_vm9 = vcmp.eq.s32.totalorder %v1354_v31, %v1431_v61 }
  0x60   : > { %vm307_vm10 = vcmp.eq.s32.totalorder %v1357_v32, %v1400_v48  ;;  %vm1561_vm11 = vcmp.ne.s32.totalorder %v226_v53, 0  ;;  %691 = vmatprep.subr.bf16.mxu0 %v525_v22  ;;  %748 = vmatprep.subr.bf16.mxu1 %v525_v22  ;;  %v989_v52 = vsel %vm406_vm7, 1.0, %v1202_v56  ;;  %v991_v29 = vsel %vm408_vm9, 1.0, %v1202_v56 }
  0x61   : > { %vm309_vm12 = vcmp.eq.s32.totalorder %v1360_v33, %v1400_v48  ;;  %v597_v30 = vsub.s32 0, %v1305_v6  ;;  %v524_v31 = vpack.c.bf16 %v500_v7, %v498_v23  ;;  %v502_v36 = vadd.f32 %v989_v52, %v957_v21 }
  0x62   : > { %v504_v37 = vadd.f32 %v991_v29, %v959_v28  ;;  %v962_v47 = vsel %vm307_vm10, 1.0, %v1202_v56  ;;  %v527_v53 = vpack.c.bf16 %v505_v20, %v503_v18  ;;  %vm411_vm14 = vcmp.eq.s32.totalorder %v1357_v32, %v1423_v60 }
  0x63   : > { %vm413_vm15 = vcmp.eq.s32.totalorder %v1360_v33, %v1423_v60  ;;  %vm306_vm0 = vcmp.eq.s32.totalorder %v1357_v32, %v1405_v50  ;;  %vm1583_vm3 = vcmp.ne.s32.totalorder %v232_v54, 0  ;;  %v964_v24 = vsel %vm309_vm12, 1.0, %v1202_v56  ;;  %vm218_vm12 = vmand %vm1597_vm4, %vm1543_vm5 }
  0x64   : > { %v994_v25 = vsel %vm411_vm14, 1.0, %v1202_v56  ;;  %v996_v57 = vsel %vm413_vm15, 1.0, %v1202_v56  ;;  %vm308_vm1 = vcmp.eq.s32.totalorder %v1360_v33, %v1405_v50  ;;  %v526_v40 = vpack.c.bf16 %v504_v37, %v502_v36 }
  0x65   : > { %v507_v51 = vadd.f32 %v994_v25, %v962_v47  ;;  %v961_v58 = vsel %vm306_vm0, 1.0, %v1202_v56  ;;  %vm410_vm8 = vcmp.eq.s32.totalorder %v1357_v32, %v1431_v61  ;;  %vm412_vm6 = vcmp.eq.s32.totalorder %v1360_v33, %v1431_v61 }
  0x66   : > { %v993_v54 = vsel %vm410_vm8, 1.0, %v1202_v56  ;;  %vm311_vm7 = vcmp.eq.s32.totalorder %v1364_v34, %v1400_v48  ;;  %vm313_vm9 = vcmp.eq.s32.totalorder %v1367_v35, %v1400_v48  ;;  %v509_v63 = vadd.f32 %v996_v57, %v964_v24 }
  0x67   : > { %v963_v32 = vsel %vm308_vm1, 1.0, %v1202_v56  ;;  %v995_v8 = vsel %vm412_vm6, 1.0, %v1202_v56  ;;  %v966_v0 = vsel %vm311_vm7, 1.0, %v1202_v56  ;;  %692 = vmatpush1.bf16.xpose.msra.mxu0 %v524_v31  ;;  %749 = vmatpush1.bf16.xpose.msra.mxu1 %v524_v31  ;;  %v506_v2 = vadd.f32 %v993_v54, %v961_v58  ;;  %vm1642_vm6 = vmand %vm218_vm12, %vm1561_vm11 }
  0x68   : > { %v968_v33 = vsel %vm313_vm9, 1.0, %v1202_v56  ;;  %vm415_vm2 = vcmp.eq.s32.totalorder %v1364_v34, %v1423_v60  ;;  %vm417_vm10 = vcmp.eq.s32.totalorder %v1367_v35, %v1423_v60  ;;  %693 = vmatprep.subr.bf16.mxu0 %v527_v53  ;;  %750 = vmatprep.subr.bf16.mxu1 %v527_v53  ;;  %vm310_vm13 = vcmp.eq.s32.totalorder %v1364_v34, %v1405_v50  ;;  %vm236_vm4 = vmand %vm1642_vm6, %vm1583_vm3 }
  0x69   : > { %v998_v4 = vsel %vm415_vm2, 1.0, %v1202_v56  ;;  %v1000_v43 = vsel %vm417_vm10, 1.0, %v1202_v56  ;;  %vm312_vm14 = vcmp.eq.s32.totalorder %v1367_v35, %v1405_v50  ;;  %vm197_vm15 = vcmp.ge.f32.partialorder %v1312_v9, 0.0 }
  0x6a   : > { %v508_v22 = vadd.f32 %v995_v8, %v963_v32  ;;  %v511_v23 = vadd.f32 %v998_v4, %v966_v0  ;;  %v513_v5 = vadd.f32 %v1000_v43, %v968_v33  ;;  %v965_v26 = vsel %vm310_vm13, 1.0, %v1202_v56 }
  0x6b   : > { %v967_v7 = vsel %vm312_vm14, 1.0, %v1202_v56  ;;  %vm414_vm0 = vcmp.eq.s32.totalorder %v1364_v34, %v1431_v61  ;;  %vm416_vm1 = vcmp.eq.s32.totalorder %v1367_v35, %v1431_v61  ;;  %vm315_vm8 = vcmp.eq.s32.totalorder %v1370_v38, %v1400_v48 }
  0x6c   : > { %v529_v13 = vpack.c.bf16 %v509_v63, %v507_v51  ;;  %v997_v34 = vsel %vm414_vm0, 1.0, %v1202_v56  ;;  %v999_v18 = vsel %vm416_vm1, 1.0, %v1202_v56  ;;  %vm317_vm7 = vcmp.eq.s32.totalorder %v1392_v45, %v1400_v48 }
  0x6d   : > { %v510_v35 = vadd.f32 %v997_v34, %v965_v26  ;;  %v512_v20 = vadd.f32 %v999_v18, %v967_v7  ;;  %v970_v21 = vsel %vm315_vm8, 1.0, %v1202_v56  ;;  %v972_v28 = vsel %vm317_vm7, 1.0, %v1202_v56 }
  0x6e   : > { %v528_v27 = vpack.c.bf16 %v508_v22, %v506_v2  ;;  %v531_v41 = vpack.c.bf16 %v513_v5, %v511_v23  ;;  %vm419_vm5 = vcmp.eq.s32.totalorder %v1370_v38, %v1423_v60  ;;  %vm421_vm11 = vcmp.eq.s32.totalorder %v1392_v45, %v1423_v60 }
  0x6f   : > { %v1002_v48 = vsel %vm419_vm5, 1.0, %v1202_v56  ;;  %v1004_v52 = vsel %vm421_vm11, 1.0, %v1202_v56  ;;  %vm314_vm9 = vcmp.eq.s32.totalorder %v1370_v38, %v1405_v50  ;;  %vm316_vm2 = vcmp.eq.s32.totalorder %v1392_v45, %v1405_v50  ;;  %694 = vmatpush1.bf16.xpose.msra.mxu0 %v526_v40  ;;  %751 = vmatpush1.bf16.xpose.msra.mxu1 %v526_v40 }
  0x70   : > { %v515_v29 = vadd.f32 %v1002_v48, %v970_v21  ;;  %v517_v31 = vadd.f32 %v1004_v52, %v972_v28  ;;  %vm418_vm10 = vcmp.eq.s32.totalorder %v1370_v38, %v1431_v61  ;;  %vm207_vm12 = vcmp.le.f32.partialorder %v1312_v9, 15.0  ;;  %695 = vmatprep.subr.bf16.mxu0 %v529_v13  ;;  %752 = vmatprep.subr.bf16.mxu1 %v529_v13 }
  0x71   : > { %v1669_v60 = vpack.c.bf16 %v512_v20, %v510_v35  ;;  %v242_v36 = vsel %vm236_vm4, %v238_v10, 0.0  ;;  %vm546_vm3 = vcmp.eq.s32.totalorder %v1305_v6, %v1520_v62  ;;  %vm548_vm13 = vcmp.eq.s32.totalorder %v1321_v16, %v1520_v62 }
  0x72   : > { %v969_v50 = vsel %vm314_vm9, 1.0, %v1202_v56  ;;  %v971_v37 = vsel %vm316_vm2, 1.0, %v1202_v56  ;;  %vm420_vm14 = vcmp.eq.s32.totalorder %v1392_v45, %v1431_v61  ;;  %v1001_v38 = vsel %vm418_vm10, 1.0, %v1202_v56 }
  0x73   : > { %v1682_v47 = vpack.c.bf16 %v517_v31, %v515_v29  ;;  %v1006_v53 = vsel %vm546_vm3, 1.0, %v1202_v56  ;;  %v1008_v10 = vsel %vm548_vm13, 1.0, %v1202_v56  ;;  %v564_v49 = vrot.slane %v1415_v55, %v1395_v46 }
  0x74   : > { %v588_v62 = vrot.slane %v242_v36, %v1324_v17  ;;  %v199_v24 = vsel %vm197_vm15, 1, %v1201_v39  ;;  %v211_v25 = vsel %vm207_vm12, 1, %v1201_v39  ;;  %vm221_vm0 = vcmp.lt.f32.partialorder %v219_v14, 8.0 }
  0x75   : > { %vm566_vm1 = vcmp.eq.s32.totalorder %v1305_v6, %v564_v49  ;;  %vm568_vm8 = vcmp.eq.s32.totalorder %v1321_v16, %v564_v49  ;;  %v602_v55 = vrot.slane %v594_v11, %v597_v30  ;;  %v201_v57 = vrot.slane %v199_v24, 1 }
  0x76   : > { %v1010_v40 = vsel %vm566_vm1, 1.0, %v1202_v56  ;;  %v1012_v51 = vsel %vm568_vm8, 1.0, %v1202_v56  ;;  %v213_v58 = vrot.slane %v211_v25, 1  ;;  %v223_v42 = vsel %vm221_vm0, 1, %v1201_v39 }
  0x77   : > { %v578_v54 = vadd.f32 %v1010_v40, %v1006_v53  ;;  %v580_v63 = vadd.f32 %v1012_v51, %v1008_v10  ;;  %vm203_vm6 = vcmp.ne.s32.totalorder %v201_v57, 0  ;;  %v225_v14 = vrot.slane %v223_v42, 5  ;;  %696 = vmatpush1.bf16.xpose.msra.mxu0 %v528_v27  ;;  %753 = vmatpush1.bf16.xpose.msra.mxu1 %v528_v27 }
  0x78   : > { %vm205_vm7 = vmand %vm197_vm15, %vm203_vm6  ;;  %vm1708_vm5 = vcmp.ne.s32.totalorder %v213_v58, 0  ;;  %v231_v8 = vrot.slane %v223_v42, 6  ;;  %v540_v0 = vrot.slane %v1389_v44, %v1395_v46  ;;  %v560_v39 = vrot.slane %v1419_v59, %v1395_v46  ;;  %697 = vmatprep.subr.bf16.mxu0 %v531_v41  ;;  %754 = vmatprep.subr.bf16.mxu1 %v531_v41 }
  0x79   : > { %v1003_v2 = vsel %vm420_vm14, 1.0, %v1202_v56  ;;  %v1720_v33 = vmul.f32 %v588_v62, %v578_v54  ;;  %v1722_v4 = vmul.f32 %v588_v62, %v580_v63  ;;  %vm209_vm15 = vmand %vm205_vm7, %vm207_vm12  ;;  %vm227_vm11 = vcmp.ne.s32.totalorder %v225_v14, 0 }
  0x7a   : > { %vm217_vm4 = vmand %vm209_vm15, %vm1708_vm5  ;;  %vm1728_vm9 = vcmp.ne.s32.totalorder %v231_v8, 0  ;;  %vm545_vm2 = vcmp.eq.s32.totalorder %v1305_v6, %v540_v0  ;;  %vm547_vm10 = vcmp.eq.s32.totalorder %v1321_v16, %v540_v0  ;;  %vm565_vm3 = vcmp.eq.s32.totalorder %v1305_v6, %v560_v39 }
  0x7b   : > { %v604_v45 = vmul.f32 %v602_v55, %v1720_v33  ;;  %v606_v46 = vmul.f32 %v602_v55, %v1722_v4  ;;  %vm229_vm13 = vmand %vm217_vm4, %vm227_vm11  ;;  %v1005_v9 = vsel %vm545_vm2, 1.0, %v1202_v56  ;;  %v1007_v59 = vsel %vm547_vm10, 1.0, %v1202_v56 }
  0x7c   : > { %v514_v61 = vadd.f32 %v1001_v38, %v969_v50  ;;  %vm235_vm12 = vmand %vm229_vm13, %vm1728_vm9  ;;  %vm567_vm14 = vcmp.eq.s32.totalorder %v1321_v16, %v560_v39  ;;  %v1009_v43 = vsel %vm565_vm3, 1.0, %v1202_v56  ;;  %v609_v22 = vsub.s32 1, %v1305_v6 }
  0x7d   : > { %v620_v23 = vpack.c.bf16 %v606_v46, %v604_v45  ;;  %v241_v5 = vsel %vm235_vm12, %v237_v15, 0.0  ;;  %v1011_v26 = vsel %vm567_vm14, 1.0, %v1202_v56  ;;  %v577_v7 = vadd.f32 %v1009_v43, %v1005_v9 }
  0x7e   : > { %v579_v12 = vadd.f32 %v1011_v26, %v1007_v59  ;;  %v584_v13 = vrot.slane %v241_v5, %v1324_v17  ;;  %v598_v34 = vrot.slane %v593_v19, %v597_v30  ;;  %v614_v16 = vrot.slane %v594_v11, %v609_v22 }
  0x7f   : > { %v516_v18 = vadd.f32 %v1003_v2, %v971_v37  ;;  %v622_v35 = vunpack.c.l.bf16 %v620_v23  ;;  %v624_v20 = vunpack.c.h.bf16 %v620_v23  ;;  %774 = vmatprep.mubr.bf16.mxu1 %v620_v23  ;;  %v610_v15 = vrot.slane %v593_v19, %v609_v22  ;;  %698 = vmatpush1.bf16.xpose.msra.mxu0 %v1669_v60 }
  0x80   : > { %755 = vmatpush1.bf16.xpose.msra.mxu1 %v1669_v60  ;;  %v589_v17 = vmul.f32 %v584_v13, %v577_v7  ;;  %v591_v56 = vmul.f32 %v584_v13, %v579_v12  ;;  %v616_v6 = vmul.f32 %v614_v16, %v1720_v33  ;;  %699 = vmatprep.subr.bf16.mxu0 %v1682_v47  ;;  %v669_v13 = vld [vmem:[#allocation2 + $0x10] sm:$0xff] }
  0x81   : > { %756 = vmatprep.subr.bf16.mxu1 %v1682_v47  ;;  %v626_v1 = vsub.f32 %v604_v45, %v622_v35  ;;  %v628_v11 = vsub.f32 %v606_v46, %v624_v20  ;;  %v618_v30 = vmul.f32 %v614_v16, %v1722_v4  ;;  %v532_v48 = vpack.c.bf16 %v516_v18, %v514_v61  ;;  %v667_v45 = vld [vmem:[#allocation2] sm:$0xff]  ;;  %v668_v61 = vld [vmem:[#allocation2 + $0x8] sm:$0xff] }
  0x82   : > { %v603_v21 = vmul.f32 %v598_v34, %v589_v17  ;;  %v605_v28 = vmul.f32 %v598_v34, %v591_v56  ;;  %v615_v27 = vmul.f32 %v610_v15, %v589_v17  ;;  %v617_v41 = vmul.f32 %v610_v15, %v591_v56  ;;  %v670_v15 = vld [vmem:[#allocation2 + $0x18] sm:$0xff] }
  0x83   : > { %v630_v3 = vpack.c.bf16 %v628_v11, %v626_v1  ;;  %v636_v19 = vpack.c.bf16 %v618_v30, %v616_v6  ;;  %v652_v38 = vpack.c.bf16 %v1722_v4, %v1720_v33  ;;  %v651_v58 = vpack.c.bf16 %v591_v56, %v589_v17 }
  0x84   : > { %v619_v52 = vpack.c.bf16 %v605_v28, %v603_v21  ;;  %v635_v37 = vpack.c.bf16 %v617_v41, %v615_v27 }
  0x85   : > { %717 = vmatprep.mubr.bf16.mxu0 %v630_v3  ;;  %v638_v29 = vunpack.c.l.bf16 %v636_v19  ;;  %v640_v31 = vunpack.c.h.bf16 %v636_v19  ;;  %v654_v55 = vunpack.c.l.bf16 %v652_v38  ;;  %v656_v57 = vunpack.c.h.bf16 %v652_v38 }
  0x86   : > { %v621_v60 = vunpack.c.l.bf16 %v619_v52  ;;  %v623_v36 = vunpack.c.h.bf16 %v619_v52  ;;  %v637_v62 = vunpack.c.l.bf16 %v635_v37  ;;  %v639_v24 = vunpack.c.h.bf16 %v635_v37 }
  0x87   : > { %v642_v50 = vsub.f32 %v616_v6, %v638_v29  ;;  %700 = vmatpush1.bf16.xpose.msra.mxu0 %v532_v48  ;;  %v644_v10 = vsub.f32 %v618_v30, %v640_v31  ;;  %v658_v42 = vsub.f32 %v1720_v33, %v654_v55  ;;  %v660_v54 = vsub.f32 %v1722_v4, %v656_v57 }
  0x88   : > { %757 = vmatpush1.bf16.xpose.msra.mxu1 %v532_v48  ;;  %v625_v47 = vsub.f32 %v603_v21, %v621_v60  ;;  %v627_v53 = vsub.f32 %v605_v28, %v623_v36  ;;  %v641_v40 = vsub.f32 %v615_v27, %v637_v62  ;;  %v643_v51 = vsub.f32 %v617_v41, %v639_v24  ;;  %v671_v28 = vld [vmem:[#allocation2 + $0x20] sm:$0xff] }
  0x89   : > { %v646_v25 = vpack.c.bf16 %v644_v10, %v642_v50  ;;  %v653_v14 = vunpack.c.l.bf16 %v651_v58  ;;  %v655_v32 = vunpack.c.h.bf16 %v651_v58  ;;  %v662_v8 = vpack.c.bf16 %v660_v54, %v658_v42 }
  0x8a   : > { %v629_v49 = vpack.c.bf16 %v627_v53, %v625_v47  ;;  %v645_v63 = vpack.c.bf16 %v643_v51, %v641_v40 }
  0x8b   : > { %v657_v0 = vsub.f32 %v589_v17, %v653_v14  ;;  %v659_v39 = vsub.f32 %v591_v56, %v655_v32 }
  0x8d   : > { %v661_v2 = vpack.c.bf16 %v659_v39, %v657_v0 }
  0x8e   : > { %718 = vmatmul.mubr.bf16.vlgmr.msra.gmra.mrb[0].mxu0 %v629_v49 }
  0x8f   : > { %775 = vmatmul.mubr.bf16.vlgmr.msra.gmra.mrb[0].mxu1 %v619_v52  ;;  %725 = vmatprep.mubr.bf16.mxu0 %v646_v25  ;;  %v672_v52 = vld [vmem:[#allocation2 + $0x28] sm:$0xff] }
  0x90   : > { %782 = vmatprep.mubr.bf16.mxu1 %v636_v19 }
  0x96   : > { %726 = vmatmul.mubr.bf16.gmra.mrb[4].mxu0 %v645_v63 }
  0x97   : > { %783 = vmatmul.mubr.bf16.gmra.mrb[4].mxu1 %v635_v37  ;;  %733 = vmatprep.mubr.bf16.mxu0 %v662_v8 }
  0x98   : > { %790 = vmatprep.mubr.bf16.mxu1 %v652_v38 }
  0x9e   : > { %734 = vmatmul.mubr.bf16.gmra.mrb[8].mxu0 %v661_v2 }
  0x9f   : > { %791 = vmatmul.mubr.bf16.gmra.mrb[8].mxu1 %v651_v58 }
 0x161   : > { %v719_v44 = vpop.f32.mrb[0].mxu0 }
 0x162   : > { %v776_v46 = vpop.f32.mrb[0].mxu1  ;;  %v721_v33 = vpop.f32.mrb[1].mxu0 }
 0x163   : > { %v777_v9 = vadd.f32 %v776_v46, %v719_v44  ;;  %v778_v59 = vpop.f32.mrb[1].mxu1  ;;  %v722_v4 = vpop.f32.mrb[2].mxu0 }
 0x164   : > { %v779_v43 = vpop.f32.mrb[2].mxu1  ;;  %v724_v5 = vpop.f32.mrb[3].mxu0 }
 0x165   : > { %v799_v22 = vadd.f32 %v777_v9, %v667_v45  ;;  %v780_v23 = vadd.f32 %v779_v43, %v722_v4  ;;  %v781_v26 = vpop.f32.mrb[3].mxu1 }
 0x167   : > { %805 = vst [vmem:[#allocation2] sm:$0xff] %v799_v22  ;;  %v800_v7 = vadd.f32 %v780_v23, %v668_v61 }
 0x169   : > { %806 = vst [vmem:[#allocation2 + $0x8] sm:$0xff] %v800_v7  ;;  %v727_v12 = vpop.f32.mrb[4].mxu0 }
 0x16a   : > { %v784_v34 = vpop.f32.mrb[4].mxu1  ;;  %v729_v18 = vpop.f32.mrb[5].mxu0 }
 0x16b   : > { %v785_v16 = vadd.f32 %v784_v34, %v727_v12  ;;  %v786_v35 = vpop.f32.mrb[5].mxu1  ;;  %v730_v20 = vpop.f32.mrb[6].mxu0 }
 0x16c   : > { %v787_v17 = vpop.f32.mrb[6].mxu1  ;;  %v732_v1 = vpop.f32.mrb[7].mxu0 }
 0x16d   : > { %v801_v56 = vadd.f32 %v785_v16, %v669_v13  ;;  %v788_v6 = vadd.f32 %v787_v17, %v730_v20  ;;  %v789_v11 = vpop.f32.mrb[7].mxu1 }
 0x16f   : > { %807 = vst [vmem:[#allocation2 + $0x10] sm:$0xff] %v801_v56  ;;  %v802_v30 = vadd.f32 %v788_v6, %v670_v15 }
 0x171   : > { %808 = vst [vmem:[#allocation2 + $0x18] sm:$0xff] %v802_v30  ;;  %v735_v21 = vpop.f32.mrb[8].mxu0 }
 0x172   : > { %v792_v3 = vpop.f32.mrb[8].mxu1  ;;  %v737_v27 = vpop.f32.mrb[9].mxu0 }
 0x173   : > { %v793_v19 = vadd.f32 %v792_v3, %v735_v21  ;;  %v794_v41 = vpop.f32.mrb[9].mxu1  ;;  %v738_v48 = vpop.f32.mrb[10].mxu0 }
 0x174   : > { %v795_v29 = vpop.f32.mrb[10].mxu1  ;;  %v740_v36 = vpop.f32.mrb[11].mxu0 }
 0x175   : > { %v803_v31 = vadd.f32 %v793_v19, %v671_v28  ;;  %v796_v60 = vadd.f32 %v795_v29, %v738_v48  ;;  %v797_v50 = vpop.f32.mrb[11].mxu1 }
 0x177   : > { %809 = vst [vmem:[#allocation2 + $0x20] sm:$0xff] %v803_v31  ;;  %v804_v37 = vadd.f32 %v796_v60, %v672_v52 }
 0x179   : > { %810 = vst [vmem:[#allocation2 + $0x28] sm:$0xff] %v804_v37 }
 0x17a PF: > { %v814_v49 = vld [vmem:[#allocation2] sm:$0xff]  ;;  %v816_v62 = vld [vmem:[#allocation2 + $0x10] sm:$0xff]  ;;  %s1021_s17 = sshll.u32 %s1188_s23, 9  ;;  %s851_s18 = sshll.u32 %s1297_s16, 4  ;;  %v815_v24 = vld [vmem:[#allocation2 + $0x8] sm:$0xff]  ;;  %s1773_s18 = int_to_ptr.vmem [resolvable:$true] %s851_s18 }
 0x17b   : > { %v817_v25 = vld [vmem:[#allocation2 + $0x18] sm:$0xff]  ;;  %s1771_s0 = scalar_lea.hbm %s1829_s3, %s1021_s17  ;;  %s1781_s23 = scalar_lea.sflag [#allocation9], %s151_s7 }
 0x17c   : > { %s1116_s26 = scalar_lea.vmem %s1773_s18, 512  ;;  %s1203_s27 = smov [#allocation8]  }
 0x17d   : > { %p1117_p11 = scmp.ne.s32.totalorder %s1773_s18, %s1116_s26  ;;  %s1120_s29 = sshll.u32 %s1203_s27, 4  ;;  %s1121_s29 = int_to_ptr.vmem [resolvable:$false] %s1120_s29 }
 0x17e   : > { %v818_v38 = vld [vmem:[#allocation2 + $0x20] sm:$0xff]  ;;  %s1122_s4 = scalar_lea.vmem %s1121_s29, 1024  ;;  %p1123_p1 = scmp.lt.s32.totalorder %s1773_s18, %s1121_s29 }
 0x17f   : > { %vm820_vm0 = vcmp.gt.f32.partialorder %v818_v38, 0.0  ;;  %p1118_p12 = pnand %p1117_p11, %p1272_p0  ;;  %p1124_p2 = scmp.lt.s32.totalorder %s1122_s4, %s1116_s26 }
 0x180   : > { %v819_v47 = vld [vmem:[#allocation2 + $0x28] sm:$0xff]  ;;  %v822_v53 = vsel %vm820_vm0, %v818_v38, 1.0 }
 0x181   : > { %vm821_vm1 = vcmp.gt.f32.partialorder %v819_v47, 0.0  ;;  %1088 = vrcp.f32 %v822_v53  ;;  %p1119_p13 = pneg %p1118_p12  ;;  %p1125_p3 = por %p1124_p2, %p1123_p1 }
 0x182   : > { %v823_v10 = vsel %vm821_vm1, %v819_v47, 1.0 }
 0x183   : > { %1090 = vrcp.f32 %v823_v10  ;;  %p1126_p5 = pnand %p1125_p3, %p1119_p13 }
 0x18b   : > { %v1089_v55 = vpop.eup %1088 }
 0x18c   : > { %v826_v40 = vmul.f32 %v1089_v55, %v814_v49  ;;  %v830_v51 = vmul.f32 %v1089_v55, %v816_v62 }
 0x18d   : > { %v1091_v57 = vpop.eup %1090 }
 0x18e   : > { %v827_v58 = vmul.f32 %v1091_v57, %v815_v24  ;;  %v831_v42 = vmul.f32 %v1091_v57, %v817_v25  ;;  %828 = vst [vmem:[%s1297_s16] sm:$0xff] %v826_v40  ;;  %1013 = vst [vmem:[%s1297_s16 + $0x10] sm:$0xff] %v830_v51 }
 0x190   : > { %829 = vst [vmem:[%s1297_s16 + $0x8] sm:$0xff] %v827_v58  ;;  %1014 = vst [vmem:[%s1297_s16 + $0x18] sm:$0xff] %v831_v42 }
 0x191   : > { %1129 = shalt.err (!%p1126_p5)
}
 0x192   : > { %s1130_s7 = scalar_lea.hbm %s1771_s0, 512  ;;  %s1134_s10 = scalar_lea.hbm %s1829_s3, 1024 }
 0x193   : > { %p1131_p6 = scmp.ne.s32.totalorder %s1771_s0, %s1130_s7  ;;  %p1135_p9 = scmp.lt.u32.totalorder %s1771_s0, %s1829_s3 }
 0x194   : > { %p1136_p10 = scmp.lt.u32.totalorder %s1134_s10, %s1130_s7  ;;  %p1138_p12 = scmp.lt.u32.totalorder %s1130_s7, %s1771_s0 }
 0x195   : > { %p1132_p7 = pnand %p1131_p6, %p1272_p0 }
 0x196   : > { %p1137_p11 = por %p1136_p10, %p1135_p9 }
 0x197   : > { %p1133_p8 = pneg %p1132_p7 }
 0x198   : > { %p1139_p13 = por %p1138_p12, %p1137_p11 }
 0x19a   : > { %p1140_p1 = pnand %p1139_p13, %p1133_p8 }
 0x19c   : > { %1143 = shalt.err (!%p1140_p1)
}
 0x19d   : > { %s1204_s13 = smov 128   ;;  %s1205_s14 = smov 8  }
 0x19e   : > { %1026 = dma.vmem_to_hbm [thread:$0]  (%p1272_p0), %s1773_s18, 512, %s1771_s0, %s1781_s23, %s1204_s13, %s1204_s13, %s1205_s14  }
 0x19f PF: > { %p1032_p2 = scmp.ge.s32.totalorder %s1196_s25, 2  ;;  %s866_s15 = sand.u32 1, %s1176_s1  }
 0x1a0   : > { %s867_s16 = scalar_lea.sflag [#allocation9], %s866_s15 }
 0x1a1   : > { %p1029_p3 = pnand %p1032_p2, %p1279_p4 }
 0x1a3   : > { %1171 = dma.done.wait (!%p1029_p3), %s867_s16, 512  }
 0x1a4   : > { %1173 = vsyncadd (!%p1029_p3), %s867_s16, 4294966784  ;;  %s26_s25 = sadd.s32 1, %s1196_s25   ;;  %s1851_s1 = smov %s1180_s21 }
 0x1a5   : > { %p23_p5 = scmp.ge.s32.totalorder %s26_s25, 4   ;;  %s1852_s21 = smov %s1184_s22 }
 0x1a6   : > { %s1853_s22 = smov %s1285_s6  ;;  %s1854_s23 = smov %s1192_s24 }
 0x1a7   : > { %s1855_s24 = smov %s1857_s28  ;;  %25 = sbr.rel (!%p23_p5) target bundleno = 29 (0x1d), region = 72 }
 0x1ae   :  { %872 = vsyncpa [#allocation9], 1 }
 0x1af   :  { %874 = vsyncpa [#allocation9 + $0x1], 1 }

</bundles_post_ra>
